<compile_context>
chip_gen: v6e
topology: v6e:2x2x1
jax: 0.10.0
libtpu: 0.0.40
codegen_flags: <defaults>
</compile_context>

<pallas_src>
import jax
import jax.numpy as jnp
from jax.experimental import pallas as pl
from jax.experimental.pallas import tpu as pltpu

LANE = 128     # vreg lane width
SUBLANE = 8    # f32 sublane count


def _round_up(x, m):
    return ((x + m - 1) // m) * m


# ----------------------------------------------------------------------------- kernel
def actor_kernel(obs_ref, goal_ref, w1o_ref, w1g_ref, b1_ref,
                 w2_ref, b2_ref, w3_ref, b3_ref, out_ref):
    """One batch tile of the Actor MLP; weights are VMEM-resident across the grid."""
    # fc[0]: Linear(obs ⊕ goal -> H) + ReLU, as two MXU matmuls + VPU adds
    # (equivalent to concat(obs, goal) @ W1 + b1, without materializing the concat).
    h1 = (jnp.dot(obs_ref[...], w1o_ref[...], preferred_element_type=jnp.float32)
          + jnp.dot(goal_ref[...], w1g_ref[...], preferred_element_type=jnp.float32)
          + b1_ref[...])
    h1 = jnp.maximum(h1, 0.0)

    # fc[2]: Linear(H -> H) + ReLU
    h2 = jnp.dot(h1, w2_ref[...], preferred_element_type=jnp.float32) + b2_ref[...]
    h2 = jnp.maximum(h2, 0.0)

    # action_out: Linear(H -> A_pad) + tanh (EUP); A_pad % 128 == 0 -> lane-dense store.
    a = jnp.dot(h2, w3_ref[...], preferred_element_type=jnp.float32) + b3_ref[...]
    out_ref[...] = jnp.tanh(a)


# ------------------------------------------------------------------------ param packing
def pack_params(params, ob_shape):
    """Split W1 by input source and zero-pad hidden/action dims to lane multiples.

    params = (w1, b1, w2, b2, w3, b3) with weights stored as (in, out), so the forward
    pass is y = x @ W + b (same math as PyTorch's y = x @ W.T + b with W of shape (out, in)).
    """
    w1, b1, w2, b2, w3, b3 = params
    d_in, H = w1.shape
    A = w3.shape[1]
    Hp = _round_up(H, LANE)
    Ap = _round_up(A, LANE)

    w1o = jnp.zeros((ob_shape, Hp), jnp.float32).at[:, :H].set(w1[:ob_shape])
    w1g = jnp.zeros((d_in - ob_shape, Hp), jnp.float32).at[:, :H].set(w1[ob_shape:])
    b1p = jnp.zeros((1, Hp), jnp.float32).at[:, :H].set(jnp.reshape(b1, (1, -1)))
    w2p = jnp.zeros((Hp, Hp), jnp.float32).at[:H, :H].set(w2)
    b2p = jnp.zeros((1, Hp), jnp.float32).at[:, :H].set(jnp.reshape(b2, (1, -1)))
    w3p = jnp.zeros((Hp, Ap), jnp.float32).at[:H, :A].set(w3)
    b3p = jnp.zeros((1, Ap), jnp.float32).at[:, :A].set(jnp.reshape(b3, (1, -1)))
    return (w1o, w1g, b1p, w2p, b2p, w3p, b3p), A


# ----------------------------------------------------------------------------- wrapper
def actor_forward(obs, goal, packed_params, action_space, *, batch_tile=256):
    """Pallas implementation of Actor.forward.

    Mirrors the PyTorch `try: cat(...) except: cat(..., 1)` behaviour: 1-D inputs are
    treated as a single unbatched sample, 2-D inputs are batched along dim 0.
    """
    w1o, w1g, b1, w2, b2, w3, b3 = packed_params

    squeeze = obs.ndim == 1
    if squeeze:
        obs = obs[None, :]
        goal = goal[None, :]

    B, d_obs = obs.shape
    d_goal = goal.shape[1]
    Hp = w2.shape[0]
    Ap = w3.shape[1]

    # Batch tile: multiple of 8 (f32 sublane), capped at `batch_tile` rows.
    tb = min(batch_tile, _round_up(B, SUBLANE))
    Bp = _round_up(B, tb)
    if Bp != B:
        obs = jnp.pad(obs, ((0, Bp - B), (0, 0)))
        goal = jnp.pad(goal, ((0, Bp - B), (0, 0)))

    grid = (Bp // tb,)

    def resident(arr):  # weight/bias block: full array, constant index -> loaded once
        return pl.BlockSpec(arr.shape, lambda i: (0, 0))

    flops = 2 * Bp * ((d_obs + d_goal) * Hp + Hp * Hp + Hp * Ap)
    bytes_accessed = 4 * (Bp * (d_obs + d_goal + Ap)
                          + (d_obs + d_goal) * Hp + Hp * Hp + Hp * Ap + 2 * Hp + Ap)

    out = pl.pallas_call(
        actor_kernel,
        out_shape=jax.ShapeDtypeStruct((Bp, Ap), jnp.float32),
        grid=grid,
        in_specs=[
            pl.BlockSpec((tb, d_obs), lambda i: (i, 0)),
            pl.BlockSpec((tb, d_goal), lambda i: (i, 0)),
            resident(w1o), resident(w1g), resident(b1),
            resident(w2), resident(b2), resident(w3), resident(b3),
        ],
        out_specs=pl.BlockSpec((tb, Ap), lambda i: (i, 0)),
        compiler_params=pltpu.CompilerParams(dimension_semantics=("parallel",)),
        cost_estimate=pl.CostEstimate(
            flops=flops, transcendentals=Bp * Ap, bytes_accessed=bytes_accessed),
    )(obs, goal, w1o, w1g, b1, w2, b2, w3, b3)

    out = out[:B, :action_space]
    return out[0] if squeeze else out


# --------------------------------------------------------------------------- init / ref
def init_params(key, ob_shape, goal_shape, hidden_dims, action_space):
    """Deterministic synthetic init (scaled normal stand-in for orthogonal init)."""
    k1, k2, k3 = jax.random.split(key, 3)
    d_in = ob_shape + goal_shape
    w1 = jax.random.normal(k1, (d_in, hidden_dims), jnp.float32) * (1.0 / jnp.sqrt(d_in))
    b1 = jnp.zeros((hidden_dims,), jnp.float32)
    w2 = jax.random.normal(k2, (hidden_dims, hidden_dims), jnp.float32) * (1.0 / jnp.sqrt(hidden_dims))
    b2 = jnp.zeros((hidden_dims,), jnp.float32)
    w3 = jax.random.normal(k3, (hidden_dims, action_space), jnp.float32) * (1.0 / jnp.sqrt(hidden_dims))
    b3 = jnp.zeros((action_space,), jnp.float32)
    return (w1, b1, w2, b2, w3, b3)


def actor_forward_ref(obs, goal, params):
    """Plain-JAX reference for correctness check."""
    w1, b1, w2, b2, w3, b3 = params
    axis = 0 if obs.ndim == 1 else 1
    x = jnp.concatenate([obs, goal], axis=axis)
    h1 = jnp.maximum(x @ w1 + b1, 0.0)
    h2 = jnp.maximum(h1 @ w2 + b2, 0.0)
    return jnp.tanh(h2 @ w3 + b3)


# --------------------------------------------------------------------------------- main
if __name__ == "__main__":
    key = jax.random.PRNGKey(0)
    k_obs, k_goal, k_param = jax.random.split(key, 3)

    batch = 8
    ob_shape = 16
    goal_shape = 16
    hidden_dims = 32
    action_space = 8

    obs = jax.random.normal(k_obs, (batch, ob_shape), jnp.float32)
    goal = jax.random.normal(k_goal, (batch, goal_shape), jnp.float32)
    params = init_params(k_param, ob_shape, goal_shape, hidden_dims, action_space)
    packed, act_dim = pack_params(params, ob_shape)

    # Batched path
    actions = actor_forward(obs, goal, packed, act_dim)
    jax.block_until_ready(actions)
    ref = actor_forward_ref(obs, goal, params)
    assert actions.shape == (batch, action_space)
    assert jnp.allclose(actions, ref, atol=1e-5, rtol=1e-5)

    # Unbatched path (PyTorch's dim-0 concat branch)
    a1 = actor_forward(obs[0], goal[0], packed, act_dim)
    jax.block_until_ready(a1)
    r1 = actor_forward_ref(obs[0], goal[0], params)
    assert a1.shape == (action_space,)
    assert jnp.allclose(a1, r1, atol=1e-5, rtol=1e-5)

    print("KERNEL_OK")
</pallas_src>

<mosaic_0001>
module attributes {stable_mosaic.version = 11 : i64} {
  func.func @actor_kernel(%arg0: i32, %arg1: memref<8x16xf32, #tpu.memory_space<vmem>>, %arg2: memref<8x16xf32, #tpu.memory_space<vmem>>, %arg3: memref<16x128xf32, #tpu.memory_space<vmem>>, %arg4: memref<16x128xf32, #tpu.memory_space<vmem>>, %arg5: memref<1x128xf32, #tpu.memory_space<vmem>>, %arg6: memref<128x128xf32, #tpu.memory_space<vmem>>, %arg7: memref<1x128xf32, #tpu.memory_space<vmem>>, %arg8: memref<128x128xf32, #tpu.memory_space<vmem>>, %arg9: memref<1x128xf32, #tpu.memory_space<vmem>>, %arg10: memref<8x128xf32, #tpu.memory_space<vmem>>) attributes {dimension_semantics = [#tpu.dimension_semantics<parallel>], iteration_bounds = array<i64: 1>, scalar_prefetch = 0 : i64, scratch_operands = 0 : i64, tpu.core_type = #tpu.core_type<tc>, window_params = [{transform_indices = @transform_0, window_bounds = array<i64: 8, 16>}, {transform_indices = @transform_1, window_bounds = array<i64: 8, 16>}, {pipeline_mode = #tpu.pipeline_mode<synchronous>, transform_indices = @transform_2, window_bounds = array<i64: 16, 128>}, {pipeline_mode = #tpu.pipeline_mode<synchronous>, transform_indices = @transform_3, window_bounds = array<i64: 16, 128>}, {pipeline_mode = #tpu.pipeline_mode<synchronous>, transform_indices = @transform_4, window_bounds = array<i64: 1, 128>}, {pipeline_mode = #tpu.pipeline_mode<synchronous>, transform_indices = @transform_5, window_bounds = array<i64: 128, 128>}, {pipeline_mode = #tpu.pipeline_mode<synchronous>, transform_indices = @transform_6, window_bounds = array<i64: 1, 128>}, {pipeline_mode = #tpu.pipeline_mode<synchronous>, transform_indices = @transform_7, window_bounds = array<i64: 128, 128>}, {pipeline_mode = #tpu.pipeline_mode<synchronous>, transform_indices = @transform_8, window_bounds = array<i64: 1, 128>}, {transform_indices = @transform_9, window_bounds = array<i64: 8, 128>}]} {
    %c0 = arith.constant 0 : index
    %c0_0 = arith.constant 0 : index
    %0 = vector.load %arg1[%c0, %c0_0] : memref<8x16xf32, #tpu.memory_space<vmem>>, vector<8x16xf32>
    %c0_1 = arith.constant 0 : index
    %c0_2 = arith.constant 0 : index
    %1 = vector.load %arg3[%c0_1, %c0_2] : memref<16x128xf32, #tpu.memory_space<vmem>>, vector<16x128xf32>
    %cst = arith.constant dense<0.000000e+00> : vector<8x128xf32>
    %2 = tpu.matmul %0, %1, %cst {dimension_numbers = #tpu.dot_dimension_numbers<[1], [0], [0], [1], [0, 0, 1, 1], [], []>} : vector<8x16xf32>, vector<16x128xf32>, vector<8x128xf32> -> vector<8x128xf32>
    %c0_3 = arith.constant 0 : index
    %c0_4 = arith.constant 0 : index
    %3 = vector.load %arg2[%c0_3, %c0_4] : memref<8x16xf32, #tpu.memory_space<vmem>>, vector<8x16xf32>
    %c0_5 = arith.constant 0 : index
    %c0_6 = arith.constant 0 : index
    %4 = vector.load %arg4[%c0_5, %c0_6] : memref<16x128xf32, #tpu.memory_space<vmem>>, vector<16x128xf32>
    %cst_7 = arith.constant dense<0.000000e+00> : vector<8x128xf32>
    %5 = tpu.matmul %3, %4, %cst_7 {dimension_numbers = #tpu.dot_dimension_numbers<[1], [0], [0], [1], [0, 0, 1, 1], [], []>} : vector<8x16xf32>, vector<16x128xf32>, vector<8x128xf32> -> vector<8x128xf32>
    %6 = arith.addf %2, %5 : vector<8x128xf32>
    %c0_8 = arith.constant 0 : index
    %c0_9 = arith.constant 0 : index
    %7 = vector.load %arg5[%c0_8, %c0_9] : memref<1x128xf32, #tpu.memory_space<vmem>>, vector<1x128xf32>
    %8 = vector.broadcast %7 : vector<1x128xf32> to vector<8x128xf32>
    %9 = arith.addf %6, %8 : vector<8x128xf32>
    %cst_10 = arith.constant 0.000000e+00 : f32
    %10 = vector.broadcast %cst_10 : f32 to vector<8x128xf32>
    %11 = arith.maximumf %9, %10 : vector<8x128xf32>
    %c0_11 = arith.constant 0 : index
    %c0_12 = arith.constant 0 : index
    %12 = vector.load %arg6[%c0_11, %c0_12] : memref<128x128xf32, #tpu.memory_space<vmem>>, vector<128x128xf32>
    %cst_13 = arith.constant dense<0.000000e+00> : vector<8x128xf32>
    %13 = tpu.matmul %11, %12, %cst_13 {dimension_numbers = #tpu.dot_dimension_numbers<[1], [0], [0], [1], [0, 0, 1, 1], [], []>} : vector<8x128xf32>, vector<128x128xf32>, vector<8x128xf32> -> vector<8x128xf32>
    %c0_14 = arith.constant 0 : index
    %c0_15 = arith.constant 0 : index
    %14 = vector.load %arg7[%c0_14, %c0_15] : memref<1x128xf32, #tpu.memory_space<vmem>>, vector<1x128xf32>
    %15 = vector.broadcast %14 : vector<1x128xf32> to vector<8x128xf32>
    %16 = arith.addf %13, %15 : vector<8x128xf32>
    %cst_16 = arith.constant 0.000000e+00 : f32
    %17 = vector.broadcast %cst_16 : f32 to vector<8x128xf32>
    %18 = arith.maximumf %16, %17 : vector<8x128xf32>
    %c0_17 = arith.constant 0 : index
    %c0_18 = arith.constant 0 : index
    %19 = vector.load %arg8[%c0_17, %c0_18] : memref<128x128xf32, #tpu.memory_space<vmem>>, vector<128x128xf32>
    %cst_19 = arith.constant dense<0.000000e+00> : vector<8x128xf32>
    %20 = tpu.matmul %18, %19, %cst_19 {dimension_numbers = #tpu.dot_dimension_numbers<[1], [0], [0], [1], [0, 0, 1, 1], [], []>} : vector<8x128xf32>, vector<128x128xf32>, vector<8x128xf32> -> vector<8x128xf32>
    %c0_20 = arith.constant 0 : index
    %c0_21 = arith.constant 0 : index
    %21 = vector.load %arg9[%c0_20, %c0_21] : memref<1x128xf32, #tpu.memory_space<vmem>>, vector<1x128xf32>
    %22 = vector.broadcast %21 : vector<1x128xf32> to vector<8x128xf32>
    %23 = arith.addf %20, %22 : vector<8x128xf32>
    %24 = math.tanh %23 : vector<8x128xf32>
    %c0_22 = arith.constant 0 : index
    %c0_23 = arith.constant 0 : index
    %25 = vector.load %arg10[%c0_22, %c0_23] : memref<8x128xf32, #tpu.memory_space<vmem>>, vector<8x128xf32>
    tpu.vector_store %arg10[%c0_22, %c0_23], %24 {strides = array<i32>} : memref<8x128xf32, #tpu.memory_space<vmem>>, vector<8x128xf32>,
    return
  }
  func.func @transform_0(%arg0: i32) -> (i32, i32) {
    %c0_i32 = arith.constant 0 : i32
    %c0_i32_0 = arith.constant 0 : i32
    return %arg0, %c0_i32 : i32, i32
  }
  func.func @transform_1(%arg0: i32) -> (i32, i32) {
    %c0_i32 = arith.constant 0 : i32
    %c0_i32_0 = arith.constant 0 : i32
    return %arg0, %c0_i32 : i32, i32
  }
  func.func @transform_2(%arg0: i32) -> (i32, i32) {
    %c0_i32 = arith.constant 0 : i32
    %c0_i32_0 = arith.constant 0 : i32
    %c0_i32_1 = arith.constant 0 : i32
    return %c0_i32, %c0_i32_0 : i32, i32
  }
  func.func @transform_3(%arg0: i32) -> (i32, i32) {
    %c0_i32 = arith.constant 0 : i32
    %c0_i32_0 = arith.constant 0 : i32
    %c0_i32_1 = arith.constant 0 : i32
    return %c0_i32, %c0_i32_0 : i32, i32
  }
  func.func @transform_4(%arg0: i32) -> (i32, i32) {
    %c0_i32 = arith.constant 0 : i32
    %c0_i32_0 = arith.constant 0 : i32
    %c0_i32_1 = arith.constant 0 : i32
    return %c0_i32, %c0_i32_0 : i32, i32
  }
  func.func @transform_5(%arg0: i32) -> (i32, i32) {
    %c0_i32 = arith.constant 0 : i32
    %c0_i32_0 = arith.constant 0 : i32
    %c0_i32_1 = arith.constant 0 : i32
    return %c0_i32, %c0_i32_0 : i32, i32
  }
  func.func @transform_6(%arg0: i32) -> (i32, i32) {
    %c0_i32 = arith.constant 0 : i32
    %c0_i32_0 = arith.constant 0 : i32
    %c0_i32_1 = arith.constant 0 : i32
    return %c0_i32, %c0_i32_0 : i32, i32
  }
  func.func @transform_7(%arg0: i32) -> (i32, i32) {
    %c0_i32 = arith.constant 0 : i32
    %c0_i32_0 = arith.constant 0 : i32
    %c0_i32_1 = arith.constant 0 : i32
    return %c0_i32, %c0_i32_0 : i32, i32
  }
  func.func @transform_8(%arg0: i32) -> (i32, i32) {
    %c0_i32 = arith.constant 0 : i32
    %c0_i32_0 = arith.constant 0 : i32
    %c0_i32_1 = arith.constant 0 : i32
    return %c0_i32, %c0_i32_0 : i32, i32
  }
  func.func @transform_9(%arg0: i32) -> (i32, i32) {
    %c0_i32 = arith.constant 0 : i32
    %c0_i32_0 = arith.constant 0 : i32
    return %arg0, %c0_i32 : i32, i32
  }
}

</mosaic_0001>

<bundles_post_ra>
// kernel: tpu_custom_call.1
= control target key start
LH: loop header
LB: loop body
LE: loop exit
PB: predicated region body
PF: predicated region fallthrough
CT: control target
= control target key end

     0   :  { %14 = vsyncpa [#allocation3], 0  ;;  %s919_s0 = inlined_call_operand.hbm [shape: f32[8,16], index: 0, kind: input, shape index: {}]   ;;  %s920_s1 = inlined_call_operand.hbm [shape: f32[8,16], index: 1, kind: input, shape index: {}]   ;;  %s921_s2 = inlined_call_operand.hbm [shape: f32[16,128], index: 2, kind: input, shape index: {}]   ;;  %s922_s3 = inlined_call_operand.hbm [shape: f32[16,128], index: 3, kind: input, shape index: {}]   ;;  %s923_s4 = inlined_call_operand.vmem [shape: f32[1,128], index: 4, kind: input, shape index: {}]   ;;  %s924_s5 = inlined_call_operand.hbm [shape: f32[128,128], index: 5, kind: input, shape index: {}]   ;;  %s925_s6 = inlined_call_operand.vmem [shape: f32[1,128], index: 6, kind: input, shape index: {}]   ;;  %s926_s7 = inlined_call_operand.hbm [shape: f32[128,128], index: 7, kind: input, shape index: {}]   ;;  %s927_s8 = inlined_call_operand.vmem [shape: f32[1,128], index: 8, kind: input, shape index: {}]   ;;  %s928_s9 = inlined_call_operand.hbm [shape: f32[8,128], index: 9, kind: output, shape index: {}]  }
   0x1   :  { %15 = vsyncpa [#allocation6], 0 }
   0x2   :  { %16 = vsyncpa [#allocation9], 0 }
   0x3   :  { %17 = vsyncpa [#allocation12], 0 }
   0x4   :  { %18 = vsyncpa [#allocation4], 0  ;;  %s772_s30 = smov [#allocation5]  }
   0x5   :  { %s35_s10 = sshll.u32 %s772_s30, 4  ;;  %s36_s10 = int_to_ptr.vmem [resolvable:$true] %s35_s10 }
   0x6   :  { %s630_s11 = scalar_lea.vmem %s36_s10, 128  ;;  %p635_p1 = scmp.lt.s32.totalorder %s36_s10, %s36_s10 }
   0x7   :  { %p631_p0 = scmp.ne.s32.totalorder %s36_s10, %s630_s11  ;;  %p636_p2 = scmp.lt.s32.totalorder %s630_s11, %s630_s11 }
   0x9   :  { %p637_p3 = por %p636_p2, %p635_p1 }
   0xb   :  { %p638_p4 = pnand %p637_p3, %p631_p0 }
   0xd   :  { %641 = shalt.err (!%p638_p4)
}
   0xe   :  { %38 = dma.hbm_to_vmem [thread:$0]  %s920_s1, 128, %s36_s10, [#allocation6]  }
   0xf   :  { %s773_s14 = smov [#allocation8]   ;;  %s774_s16 = smov [#allocation2]  }
  0x10   :  { %s56_s15 = sshll.u32 %s773_s14, 4  ;;  %s25_s17 = sshll.u32 %s774_s16, 4  ;;  %s57_s15 = int_to_ptr.vmem [resolvable:$true] %s56_s15  ;;  %s26_s17 = int_to_ptr.vmem [resolvable:$true] %s25_s17 }
  0x11   :  { %s650_s18 = scalar_lea.vmem %s57_s15, 256  ;;  %p655_p6 = scmp.lt.s32.totalorder %s57_s15, %s57_s15 }
  0x12   :  { %p651_p5 = scmp.ne.s32.totalorder %s57_s15, %s650_s18  ;;  %p656_p7 = scmp.lt.s32.totalorder %s650_s18, %s650_s18 }
  0x14   :  { %p657_p8 = por %p656_p7, %p655_p6 }
  0x16   :  { %p658_p9 = pnand %p657_p8, %p651_p5 }
  0x18   :  { %661 = shalt.err (!%p658_p9)
}
  0x19   :  { %s775_s19 = smov 128   ;;  %s776_s20 = smov 8  }
  0x1a   :  { %62 = dma.hbm_to_vmem [thread:$0]  %s922_s3, 256, %s57_s15, [#allocation9], %s775_s19, %s775_s19, %s776_s20  }
  0x1b   :  { %s670_s1 = scalar_lea.vmem %s26_s17, 128  ;;  %p675_p11 = scmp.lt.s32.totalorder %s26_s17, %s26_s17 }
  0x1c   :  { %p671_p10 = scmp.ne.s32.totalorder %s26_s17, %s670_s1  ;;  %p676_p12 = scmp.lt.s32.totalorder %s670_s1, %s670_s1 }
  0x1e   :  { %p677_p13 = por %p676_p12, %p675_p11 }
  0x20   :  { %p678_p0 = pnand %p677_p13, %p671_p10 }
  0x22   :  { %681 = shalt.err (!%p678_p0)
}
  0x23   :  { %28 = dma.hbm_to_vmem [thread:$0]  %s919_s0, 128, %s26_s17, [#allocation3]  }
  0x24   :  { %s777_s25 = smov [#allocation7]   ;;  %s778_s27 = smov [#allocation10]  }
  0x25   :  { %s44_s26 = sshll.u32 %s777_s25, 4  ;;  %s70_s28 = sshll.u32 %s778_s27, 4  ;;  %s45_s26 = int_to_ptr.vmem [resolvable:$true] %s44_s26  ;;  %s71_s28 = int_to_ptr.vmem [resolvable:$true] %s70_s28 }
  0x26   :  { %s690_s29 = scalar_lea.vmem %s45_s26, 256  ;;  %p695_p2 = scmp.lt.s32.totalorder %s45_s26, %s45_s26 }
  0x27   :  { %p691_p1 = scmp.ne.s32.totalorder %s45_s26, %s690_s29  ;;  %p696_p3 = scmp.lt.s32.totalorder %s690_s29, %s690_s29 }
  0x29   :  { %p697_p4 = por %p696_p3, %p695_p2 }
  0x2b   :  { %p698_p5 = pnand %p697_p4, %p691_p1 }
  0x2d   :  { %701 = shalt.err (!%p698_p5)
}
  0x2e   :  { %50 = dma.hbm_to_vmem [thread:$0]  %s921_s2, 256, %s45_s26, [#allocation6], %s775_s19, %s775_s19, %s776_s20  }
  0x2f   :  { %s710_s0 = scalar_lea.vmem %s71_s28, 2048  ;;  %p715_p7 = scmp.lt.s32.totalorder %s71_s28, %s71_s28 }
  0x30   :  { %p711_p6 = scmp.ne.s32.totalorder %s71_s28, %s710_s0  ;;  %p716_p8 = scmp.lt.s32.totalorder %s710_s0, %s710_s0 }
  0x32   :  { %p717_p9 = por %p716_p8, %p715_p7 }
  0x34   :  { %p718_p10 = pnand %p717_p9, %p711_p6 }
  0x36   :  { %721 = shalt.err (!%p718_p10)
}
  0x37   :  { %76 = dma.hbm_to_vmem [thread:$0]  %s924_s5, 2048, %s71_s28, [#allocation9], %s775_s19, %s775_s19, %s776_s20  }
  0x38   :  { %s779_s12 = smov [#allocation11]  }
  0x39   :  { %s84_s13 = sshll.u32 %s779_s12, 4  ;;  %s85_s13 = int_to_ptr.vmem [resolvable:$true] %s84_s13 }
  0x3a   :  { %s730_s14 = scalar_lea.vmem %s85_s13, 2048  ;;  %p735_p12 = scmp.lt.s32.totalorder %s85_s13, %s85_s13 }
  0x3b   :  { %p731_p11 = scmp.ne.s32.totalorder %s85_s13, %s730_s14  ;;  %p736_p13 = scmp.lt.s32.totalorder %s730_s14, %s730_s14 }
  0x3d   :  { %p737_p0 = por %p736_p13, %p735_p12 }
  0x3f   :  { %p738_p1 = pnand %p737_p0, %p731_p11 }
  0x41   :  { %741 = shalt.err (!%p738_p1)
}
  0x42   :  { %90 = dma.hbm_to_vmem [thread:$0]  %s926_s7, 2048, %s85_s13, [#allocation12], %s775_s19, %s775_s19, %s776_s20  }
  0x43   :  { %762 = dma.done.wait [#allocation3], 128  }
  0x44   :  { %763 = vsyncadd [#allocation3], 4294967168 }
  0x45   :  { %764 = dma.done.wait [#allocation6], 384  }
  0x46   :  { %765 = vsyncadd [#allocation6], 4294966912 }
  0x47   :  { %766 = dma.done.wait [#allocation9], 2304  }
  0x48   :  { %767 = vsyncadd [#allocation9], 4294964992 }
  0x49   :  { %768 = dma.done.wait [#allocation12], 2048  }
  0x4a   :  { %769 = vsyncadd [#allocation12], 4294965248  ;;  %v780_v0 = vmov 0.0   ;;  %vm781_vm0 = vmmov 0   ;;  %v116_v1 = vld [vmem:[#allocation8 + $0x8] sm:$0xff]  ;;  %v113_v2 = vld [vmem:[#allocation7 + $0x8] sm:$0xff] }
  0x4b   :  { %525 = vmatprep.subr.mxu0 %v780_v0  ;;  %532 = vmatprep.subr.mxu1 %v780_v0  ;;  %v115_v3 = vld [vmem:[#allocation8] sm:$0xff]  ;;  %v112_v4 = vld [vmem:[#allocation7] sm:$0xff]  ;;  %v114_v5 = vld [vmem:[#allocation5] sm:$0xff]  ;;  %vm117_vm1 = vcmask 130048   ;;  %s782_s19 = smov [#allocation13]  }
  0x4c   :  { %529 = vmatprep.mubr.msk.f32.mxu0 %vm781_vm0, %v780_v0  ;;  %536 = vmatprep.mubr.msk.f32.mxu1 %vm781_vm0, %v780_v0  ;;  %v111_v6 = vld [vmem:[#allocation2] sm:$0xff]  ;;  %v288_v7 = vld [vmem:[#allocation10 + $0x78] sm:$0xff]  ;;  %v286_v9 = vld [vmem:[#allocation10 + $0x68] sm:$0xff]  ;;  %s468_s20 = sshll.u32 %s782_s19, 4  ;;  %s469_s20 = int_to_ptr.vmem [resolvable:$true] %s468_s20 }
  0x4d   :  { %526 = vmatpush3.msra.mxu0 %v116_v1  ;;  %533 = vmatpush3.msra.mxu1 %v113_v2  ;;  %v287_v8 = vld [vmem:[#allocation10 + $0x70] sm:$0xff]  ;;  %v285_v10 = vld [vmem:[#allocation10 + $0x60] sm:$0xff]  ;;  %v284_v11 = vld [vmem:[#allocation10 + $0x58] sm:$0xff]  ;;  %s742_s21 = scalar_lea.vmem %s469_s20, 128  ;;  %p747_p3 = scmp.lt.s32.totalorder %s469_s20, %s469_s20 }
  0x4e   :  { %527 = vmatprep.subr.mxu0 %v780_v0  ;;  %534 = vmatprep.subr.mxu1 %v780_v0  ;;  %v283_v12 = vld [vmem:[#allocation10 + $0x50] sm:$0xff]  ;;  %v282_v13 = vld [vmem:[#allocation10 + $0x48] sm:$0xff]  ;;  %v281_v14 = vld [vmem:[#allocation10 + $0x40] sm:$0xff]  ;;  %p743_p2 = scmp.ne.s32.totalorder %s469_s20, %s742_s21  ;;  %p748_p4 = scmp.lt.s32.totalorder %s742_s21, %s742_s21 }
  0x4f   :  { %528 = vmatpush3.msra.mxu0 %v115_v3  ;;  %535 = vmatpush3.msra.mxu1 %v112_v4  ;;  %v280_v15 = vld [vmem:[#allocation10 + $0x38] sm:$0xff]  ;;  %v279_v16 = vld [vmem:[#allocation10 + $0x30] sm:$0xff]  ;;  %v278_v17 = vld [vmem:[#allocation10 + $0x28] sm:$0xff] }
  0x50   :  { %530 = vmatmul.mubr.msk.f32.vlgmr.msra.gmra.mxu0 %vm117_vm1, %v114_v5  ;;  %537 = vmatmul.mubr.msk.f32.vlgmr.msra.gmra.mxu1 %vm117_vm1, %v111_v6  ;;  %v277_v18 = vld [vmem:[#allocation10 + $0x20] sm:$0xff]  ;;  %v276_v19 = vld [vmem:[#allocation10 + $0x18] sm:$0xff]  ;;  %v275_v20 = vld [vmem:[#allocation10 + $0x10] sm:$0xff]  ;;  %p749_p5 = por %p748_p4, %p747_p3 }
  0x51   :  { %539 = vmatprep.subr.mxu0 %v780_v0  ;;  %571 = vmatprep.mubr.msk.f32.mxu0 %vm781_vm0, %v780_v0  ;;  %v274_v21 = vld [vmem:[#allocation10 + $0x8] sm:$0xff]  ;;  %v273_v22 = vld [vmem:[#allocation10] sm:$0xff]  ;;  %v382_v23 = vld [vmem:[#allocation11 + $0x78] sm:$0xff] }
  0x52   :  { %540 = vmatpush3.msra.mxu0 %v288_v7  ;;  %574 = vmatprep.subr.mxu1 %v780_v0  ;;  %v381_v24 = vld [vmem:[#allocation11 + $0x70] sm:$0xff]  ;;  %v380_v25 = vld [vmem:[#allocation11 + $0x68] sm:$0xff]  ;;  %v379_v26 = vld [vmem:[#allocation11 + $0x60] sm:$0xff]  ;;  %p750_p6 = pnand %p749_p5, %p743_p2 }
  0x53   :  { %541 = vmatprep.subr.mxu0 %v780_v0  ;;  %606 = vmatprep.mubr.msk.f32.mxu1 %vm781_vm0, %v780_v0  ;;  %v378_v27 = vld [vmem:[#allocation11 + $0x58] sm:$0xff]  ;;  %v377_v28 = vld [vmem:[#allocation11 + $0x50] sm:$0xff]  ;;  %v376_v29 = vld [vmem:[#allocation11 + $0x48] sm:$0xff] }
  0x54   :  { %542 = vmatpush3.msra.mxu0 %v287_v8  ;;  %575 = vmatpush3.msra.mxu1 %v382_v23  ;;  %v375_v30 = vld [vmem:[#allocation11 + $0x40] sm:$0xff]  ;;  %v374_v31 = vld [vmem:[#allocation11 + $0x38] sm:$0xff]  ;;  %v373_v32 = vld [vmem:[#allocation11 + $0x30] sm:$0xff] }
  0x55   :  { %543 = vmatprep.subr.mxu0 %v780_v0  ;;  %576 = vmatprep.subr.mxu1 %v780_v0  ;;  %v372_v33 = vld [vmem:[#allocation11 + $0x28] sm:$0xff]  ;;  %v371_v34 = vld [vmem:[#allocation11 + $0x20] sm:$0xff]  ;;  %v370_v35 = vld [vmem:[#allocation11 + $0x18] sm:$0xff] }
  0x56   :  { %544 = vmatpush3.msra.mxu0 %v286_v9  ;;  %577 = vmatpush3.msra.mxu1 %v381_v24  ;;  %v482_v38 = vld [vmem:[%s923_s4] ss:$0 sm:$0xff]  ;;  %v368_v45 = vld [vmem:[#allocation11 + $0x8] sm:$0xff]  ;;  %v367_v46 = vld [vmem:[#allocation11] sm:$0xff] }
  0x57   :  { %545 = vmatprep.subr.mxu0 %v780_v0  ;;  %578 = vmatprep.subr.mxu1 %v780_v0  ;;  %v369_v44 = vld [vmem:[#allocation11 + $0x10] sm:$0xff] }
  0x58   :  { %546 = vmatpush3.msra.mxu0 %v285_v10  ;;  %579 = vmatpush3.msra.mxu1 %v380_v25  ;;  %v483_v47 = vld [vmem:[%s925_s6] ss:$0 sm:$0xff] }
  0x59   :  { %547 = vmatprep.subr.mxu0 %v780_v0  ;;  %580 = vmatprep.subr.mxu1 %v780_v0  ;;  %v484_v52 = vld [vmem:[%s927_s8] ss:$0 sm:$0xff] }
  0x5a   :  { %548 = vmatpush3.msra.mxu0 %v284_v11  ;;  %581 = vmatpush3.msra.mxu1 %v379_v26 }
  0x5b   :  { %549 = vmatprep.subr.mxu0 %v780_v0  ;;  %582 = vmatprep.subr.mxu1 %v780_v0 }
  0x5c   :  { %550 = vmatpush3.msra.mxu0 %v283_v12  ;;  %583 = vmatpush3.msra.mxu1 %v378_v27 }
  0x5d   :  { %551 = vmatprep.subr.mxu0 %v780_v0  ;;  %584 = vmatprep.subr.mxu1 %v780_v0 }
  0x5e   :  { %552 = vmatpush3.msra.mxu0 %v282_v13  ;;  %585 = vmatpush3.msra.mxu1 %v377_v28 }
  0x5f   :  { %553 = vmatprep.subr.mxu0 %v780_v0  ;;  %586 = vmatprep.subr.mxu1 %v780_v0 }
  0x60   :  { %554 = vmatpush3.msra.mxu0 %v281_v14  ;;  %587 = vmatpush3.msra.mxu1 %v376_v29 }
  0x61   :  { %555 = vmatprep.subr.mxu0 %v780_v0  ;;  %588 = vmatprep.subr.mxu1 %v780_v0 }
  0x62   :  { %556 = vmatpush3.msra.mxu0 %v280_v15  ;;  %589 = vmatpush3.msra.mxu1 %v375_v30 }
  0x63   :  { %557 = vmatprep.subr.mxu0 %v780_v0  ;;  %590 = vmatprep.subr.mxu1 %v780_v0 }
  0x64   :  { %558 = vmatpush3.msra.mxu0 %v279_v16  ;;  %591 = vmatpush3.msra.mxu1 %v374_v31 }
  0x65   :  { %559 = vmatprep.subr.mxu0 %v780_v0  ;;  %592 = vmatprep.subr.mxu1 %v780_v0 }
  0x66   :  { %560 = vmatpush3.msra.mxu0 %v278_v17  ;;  %593 = vmatpush3.msra.mxu1 %v373_v32 }
  0x67   :  { %561 = vmatprep.subr.mxu0 %v780_v0  ;;  %594 = vmatprep.subr.mxu1 %v780_v0 }
  0x68   :  { %562 = vmatpush3.msra.mxu0 %v277_v18  ;;  %595 = vmatpush3.msra.mxu1 %v372_v33 }
  0x69   :  { %563 = vmatprep.subr.mxu0 %v780_v0  ;;  %596 = vmatprep.subr.mxu1 %v780_v0 }
  0x6a   :  { %564 = vmatpush3.msra.mxu0 %v276_v19  ;;  %597 = vmatpush3.msra.mxu1 %v371_v34 }
  0x6b   :  { %565 = vmatprep.subr.mxu0 %v780_v0  ;;  %598 = vmatprep.subr.mxu1 %v780_v0 }
  0x6c   :  { %566 = vmatpush3.msra.mxu0 %v275_v20  ;;  %599 = vmatpush3.msra.mxu1 %v370_v35 }
  0x6d   :  { %567 = vmatprep.subr.mxu0 %v780_v0  ;;  %600 = vmatprep.subr.mxu1 %v780_v0 }
  0x6e   :  { %568 = vmatpush3.msra.mxu0 %v274_v21  ;;  %601 = vmatpush3.msra.mxu1 %v369_v44 }
  0x6f   :  { %569 = vmatprep.subr.mxu0 %v780_v0  ;;  %602 = vmatprep.subr.mxu1 %v780_v0 }
  0x70   :  { %570 = vmatpush3.msra.mxu0 %v273_v22  ;;  %603 = vmatpush3.msra.mxu1 %v368_v45 }
  0x71   :  { %604 = vmatprep.subr.mxu1 %v780_v0 }
  0x72   :  { %605 = vmatpush3.msra.mxu1 %v367_v46 }
 0x110   :  { %v187_v36 = vpop.f32.mrf.mxu0  ;;  %v260_v37 = vpop.f32.mrf.mxu1 }
 0x111   :  { %v261_v39 = vadd.f32 %v260_v37, %v187_v36 }
 0x112   :  { %v531_v40 = vpop.f32.mrf.mxu0  ;;  %v538_v41 = vpop.f32.mrf.mxu1 }
 0x113   :  { %v271_v42 = vadd.f32 %v482_v38, %v261_v39 }
 0x115   :  { %v272_v43 = vmax.f32 %v271_v42, 0.0 }
 0x117   :  { %572 = vmatmul.mubr.f32.vlgmr.msra.gmra.mxu0 %v272_v43 }
 0x1d7   :  { %v362_v48 = vpop.f32.mrf.mxu0 }
 0x1d8   :  { %v363_v49 = vadd.f32 %v483_v47, %v362_v48 }
 0x1d9   :  { %v573_v50 = vpop.f32.mrf.mxu0 }
 0x1da   :  { %v366_v51 = vmax.f32 %v363_v49, 0.0 }
 0x1dc   :  { %607 = vmatmul.mubr.f32.vlgmr.msra.gmra.mxu1 %v366_v51 }
 0x29c   :  { %v456_v53 = vpop.f32.mrf.mxu1 }
 0x29d   :  { %v457_v54 = vadd.f32 %v484_v52, %v456_v53 }
 0x29e   :  { %v608_v55 = vpop.f32.mrf.mxu1 }
 0x29f   :  { %620 = vtanh.f32 %v457_v54 }
 0x2ac   :  { %v621_v56 = vpop.eup %620 }
 0x2ad   :  { %461 = vst [vmem:[#allocation13] sm:$0xff] %v621_v56 }
 0x2ae   :  { %753 = shalt.err (!%p750_p6)
}
 0x2af   :  { %471 = dma.vmem_to_hbm [thread:$0]  %s469_s20, 128, %s928_s9, [#allocation4]  }
 0x2b0   :  { %770 = dma.done.wait [#allocation4], 128  }
 0x2b1   :  { %771 = vsyncadd [#allocation4], 4294967168 }
 0x2b2   :  { %475 = vsyncpa [#allocation3], 1 }
 0x2b3   :  { %476 = vsyncpa [#allocation6], 1 }
 0x2b4   :  { %477 = vsyncpa [#allocation9], 1 }
 0x2b5   :  { %478 = vsyncpa [#allocation12], 1 }
 0x2b6   :  { %479 = vsyncpa [#allocation4], 1 }

</bundles_post_ra>
